<compile_context>
chip_gen: v6e
topology: v6e:2x2x1
jax: 0.10.0
libtpu: 0.0.40
codegen_flags: <defaults>
</compile_context>

<pallas_src>
import functools

import jax
import jax.numpy as jnp
from jax.experimental import pallas as pl
from jax.experimental.pallas import tpu as pltpu


# ----------------------------- activation map ------------------------------
def _apply_act(x, name):
    """Activation epilogue in float32.  relu stays on the VPU; transcendental
    activations use one EUP exp + one approx EUP reciprocal."""
    if name == "relu":
        return jnp.maximum(x, 0.0)
    if name == "sigmoid":
        return pl.reciprocal(1.0 + jnp.exp(-x), approx=True)
    if name == "swish":
        return x * pl.reciprocal(1.0 + jnp.exp(-x), approx=True)
    if name == "tanh":
        # tanh(x) = 1 - 2 / (exp(2x) + 1)
        return 1.0 - 2.0 * pl.reciprocal(jnp.exp(2.0 * x) + 1.0, approx=True)
    raise ValueError(f"Unsupported activation: {name}")


# ------------------------------- kernel ------------------------------------
def _mlp_kernel(x_ref, w1_ref, b1_ref, w2_ref, b2_ref, wo_ref, bo_ref, o_ref,
                *, act_name):
    cdt = w1_ref.dtype  # streaming / MXU dtype (bf16 or f32)

    # In-kernel cast of the x tile (keeps the wrapper from doing an HBM pass over x).
    x = x_ref[...].astype(cdt)

    # Hidden layer 1: Dense(D_in -> H1) + activation (dropout = identity at eval).
    h = jnp.dot(x, w1_ref[...], preferred_element_type=jnp.float32)
    h = _apply_act(h + b1_ref[...], act_name)

    # Hidden layer 2: Dense(H1 -> H2) + activation.
    h = jnp.dot(h.astype(cdt), w2_ref[...], preferred_element_type=jnp.float32)
    h = _apply_act(h + b2_ref[...], act_name)

    # Output layer, written transposed so the batch lands on the lane axis:
    #   out_t[d, m] = sum_k Wo[d, k] * h[m, k]   (Wo kept in PyTorch [out, in] layout)
    out_t = jax.lax.dot_general(
        wo_ref[...], h.astype(cdt),
        dimension_numbers=(((1,), (1,)), ((), ())),
        preferred_element_type=jnp.float32)
    o_ref[...] = (out_t + bo_ref[...]).astype(o_ref.dtype)


# ------------------------------ wrapper helpers -----------------------------
def _round_up(n, m):
    return ((n + m - 1) // m) * m


def _cdiv(a, b):
    return -(-a // b)


def _device_tuning():
    """(default batch tile, chip has 2 TensorCores) from the device kind string."""
    try:
        kind = jax.devices()[0].device_kind.lower()
    except Exception:
        return 4096, False
    two_tc = any(t in kind for t in ("v3", "v4", "v5p", "7"))
    if "7" in kind:                                   # v7x: ~3.2 TB/s HBM -> largest tiles
        return 8192, two_tc
    if "v5 lite" in kind or "v5e" in kind or "v5lite" in kind:
        return 2048, two_tc                           # v5e: ~0.82 TB/s HBM
    return 4096, two_tc                               # v6e / default


def _choose_tile(B, batch_tile, two_tc):
    """Batch tile (multiple of 128, <= batch_tile, no larger than needed) and padded B."""
    bt = min(batch_tile, _round_up(B, 128))
    bt = max(128, (bt // 128) * 128)
    if two_tc and B > 128:
        # Megacore: give both TensorCores work, with an even step count so no TC idles.
        nsteps = _cdiv(B, bt)
        if nsteps == 1:
            nsteps = 2
        elif nsteps % 2 == 1:
            nsteps += 1
        bt = max(128, _round_up(_cdiv(B, nsteps), 128))
    return bt, _round_up(B, bt)


# ------------------------------ wrapper -------------------------------------
def synthetic_distance_forward(x, params, *, act_name="relu", batch_tile=None,
                               compute_dtype=jnp.bfloat16):
    """Fused forward of SyntheticDistance (two hidden Dense layers + output Linear).

    params = (w1 [D_in,H1], b1 [1,H1], w2 [H1,H2], b2 [1,H2],
              wo [D_out,H2]  (PyTorch [out,in] layout), bo [D_out,1]).
    Returns float32 array of shape (B, D_out).
    """
    w1, b1, w2, b2, wo, bo = params
    B, D_in = x.shape
    H1 = w1.shape[1]
    H2 = w2.shape[1]
    D_out = wo.shape[0]

    default_bt, two_tc = _device_tuning()
    bt, B_pad = _choose_tile(B, batch_tile if batch_tile is not None else default_bt, two_tc)

    # Only the ragged tail (< bt rows) is zero padded; no dtype conversion pass over x.
    # TODO(synk): drop the pad entirely via an index_map clamp + masked store for the last tile.
    if B_pad != B:
        x = jnp.pad(x, ((0, B_pad - B), (0, 0)))
    grid = (B_pad // bt,)

    # Weights stream in compute_dtype (bf16 feeds the bf16 MXU); biases and all
    # accumulation/epilogue math stay float32.  Weight casts are ~100 KB, one-off.
    w1c = w1.astype(compute_dtype)
    w2c = w2.astype(compute_dtype)
    woc = wo.astype(compute_dtype)
    b1f = b1.astype(jnp.float32)
    b2f = b2.astype(jnp.float32)
    bof = bo.astype(jnp.float32)

    kernel = functools.partial(_mlp_kernel, act_name=act_name)

    flops = 2 * B_pad * (D_in * H1 + H1 * H2 + H2 * D_out)
    transcendentals = 0 if act_name == "relu" else 2 * B_pad * (H1 + H2)
    bytes_accessed = (B_pad * D_in * x.dtype.itemsize            # x
                      + B_pad * D_out * 4                         # out
                      + (D_in * H1 + H1 * H2 + H2 * D_out) * jnp.dtype(compute_dtype).itemsize
                      + (H1 + H2 + D_out) * 4)                    # biases
    cost = pl.CostEstimate(flops=flops, transcendentals=transcendentals,
                           bytes_accessed=bytes_accessed)

    def _weight_spec(shape, use_buffered):
        # Constant index_map -> fetched once; Buffered(1) halves its VMEM buffers.
        if use_buffered:
            return pl.BlockSpec(shape, lambda i: (0, 0), pipeline_mode=pl.Buffered(1))
        return pl.BlockSpec(shape, lambda i: (0, 0))

    def _call(use_buffered):
        in_specs = [
            pl.BlockSpec((bt, D_in), lambda i: (i, 0)),          # x tile (batch-major)
            _weight_spec((D_in, H1), use_buffered),              # W1
            _weight_spec((1, H1), use_buffered),                 # b1
            _weight_spec((H1, H2), use_buffered),                # W2
            _weight_spec((1, H2), use_buffered),                 # b2
            _weight_spec((D_out, H2), use_buffered),             # Wo ([out, in] layout)
            _weight_spec((D_out, 1), use_buffered),              # bo
        ]
        return pl.pallas_call(
            kernel,
            out_shape=jax.ShapeDtypeStruct((D_out, B_pad), jnp.float32),
            grid_spec=pl.GridSpec(
                grid=grid,
                in_specs=in_specs,
                out_specs=pl.BlockSpec((D_out, bt), lambda i: (0, i)),  # lane-dense writes
            ),
            compiler_params=pltpu.CompilerParams(
                dimension_semantics=("parallel",),
                vmem_limit_bytes=48 * 1024 * 1024,
            ),
            cost_estimate=cost,
        )(x, w1c, b1f, w2c, b2f, woc, bof)

    try:
        out_t = _call(True)
    except Exception:
        # Fallback for JAX builds that reject pipeline_mode=pl.Buffered(1).
        out_t = _call(False)

    # Tiny layout plumbing back to the PyTorch (B, D_out) convention.
    return out_t[:, :B].T


# --------------------- deterministic parameter init -------------------------
def _init_dense(key, fan_in, fan_out):
    """PyTorch nn.Linear-style U(-1/sqrt(fan_in), 1/sqrt(fan_in)); weight stored [in, out]."""
    kw, kb = jax.random.split(key)
    bound = 1.0 / float(fan_in) ** 0.5
    w = jax.random.uniform(kw, (fan_in, fan_out), jnp.float32, -bound, bound)
    b = jax.random.uniform(kb, (1, fan_out), jnp.float32, -bound, bound)
    return w, b


def _init_output(key, fan_in, fan_out):
    """Output nn.Linear; weight kept in PyTorch [out, in] layout, bias [out, 1]."""
    kw, kb = jax.random.split(key)
    bound = 1.0 / float(fan_in) ** 0.5
    w = jax.random.uniform(kw, (fan_out, fan_in), jnp.float32, -bound, bound)
    b = jax.random.uniform(kb, (fan_out, 1), jnp.float32, -bound, bound)
    return w, b


def _ref_act(x, name):
    if name == "relu":
        return jnp.maximum(x, 0.0)
    if name == "tanh":
        return jnp.tanh(x)
    if name == "sigmoid":
        return jax.nn.sigmoid(x)
    if name == "swish":
        return x * jax.nn.sigmoid(x)
    raise ValueError(name)


def pure_jax_reference(x, params, act_name="relu"):
    w1, b1, w2, b2, wo, bo = params
    h = _ref_act(x @ w1 + b1, act_name)
    h = _ref_act(h @ w2 + b2, act_name)
    return h @ wo.T + bo.T


if __name__ == "__main__":
    # SyntheticDistance config: input_type="concat", fp_size=16 -> input_dim=32,
    # hidden_sizes="128,128", hidden_activation="relu", output_dim=1,
    # dropout=0.3 (identity at inference).
    fp_size = 16
    input_dim = fp_size * 2
    hidden_sizes = [128, 128]
    output_dim = 1

    key = jax.random.PRNGKey(0)
    k_x1, k_x2, k_x3, k1, k2, k3 = jax.random.split(key, 6)

    w1, b1 = _init_dense(k1, input_dim, hidden_sizes[0])
    w2, b2 = _init_dense(k2, hidden_sizes[0], hidden_sizes[1])
    wo, bo = _init_output(k3, hidden_sizes[1], output_dim)
    params = (w1, b1, w2, b2, wo, bo)

    # --- small batch, f32 path, relu (exercises ragged-tail padding; tight tolerance) ---
    batch1 = 8
    x1 = (jax.random.uniform(k_x1, (batch1, input_dim)) > 0.5).astype(jnp.float32)
    out1 = jax.block_until_ready(
        synthetic_distance_forward(x1, params, act_name="relu",
                                   compute_dtype=jnp.float32))
    ref1 = pure_jax_reference(x1, params, "relu")
    assert out1.shape == (batch1, output_dim)
    assert jnp.allclose(out1, ref1, atol=1e-5, rtol=1e-5), "f32 relu mismatch vs reference"

    # --- larger, non-tile-multiple batch, bf16 streaming path (auto tile sizing) ---
    batch2 = 300
    x2 = (jax.random.uniform(k_x2, (batch2, input_dim)) > 0.5).astype(jnp.float32)
    out2 = jax.block_until_ready(
        synthetic_distance_forward(x2, params, act_name="relu",
                                   compute_dtype=jnp.bfloat16))
    ref2 = pure_jax_reference(x2, params, "relu")
    assert out2.shape == (batch2, output_dim)
    assert jnp.allclose(out2, ref2, atol=5e-2, rtol=5e-2), "bf16 relu mismatch vs reference"

    # --- transcendental activation path (EUP exp + approx reciprocal), f32, loose tol ---
    batch3 = 40
    x3 = (jax.random.uniform(k_x3, (batch3, input_dim)) > 0.5).astype(jnp.float32)
    out3 = jax.block_until_ready(
        synthetic_distance_forward(x3, params, act_name="sigmoid",
                                   compute_dtype=jnp.float32))
    ref3 = pure_jax_reference(x3, params, "sigmoid")
    assert out3.shape == (batch3, output_dim)
    assert jnp.allclose(out3, ref3, atol=3e-2, rtol=3e-2), "sigmoid mismatch vs reference"

    # nn.Dropout is identity at inference; CustomLoss/MSELoss are training-only.
    print("KERNEL_OK")
</pallas_src>

<mosaic_0001>
module attributes {stable_mosaic.version = 11 : i64} {
  func.func @_mlp_kernel(%arg0: i32, %arg1: memref<128x32xf32, #tpu.memory_space<vmem>>, %arg2: memref<32x128xf32, #tpu.memory_space<vmem>>, %arg3: memref<1x128xf32, #tpu.memory_space<vmem>>, %arg4: memref<128x128xf32, #tpu.memory_space<vmem>>, %arg5: memref<1x128xf32, #tpu.memory_space<vmem>>, %arg6: memref<1x128xf32, #tpu.memory_space<vmem>>, %arg7: memref<1x1xf32, #tpu.memory_space<vmem>>, %arg8: memref<1x128xf32, #tpu.memory_space<vmem>>) attributes {dimension_semantics = [#tpu.dimension_semantics<parallel>], iteration_bounds = array<i64: 1>, scalar_prefetch = 0 : i64, scratch_operands = 0 : i64, tpu.core_type = #tpu.core_type<tc>, window_params = [{transform_indices = @transform_0, window_bounds = array<i64: 128, 32>}, {pipeline_mode = #tpu.pipeline_mode<synchronous>, transform_indices = @transform_1, window_bounds = array<i64: 32, 128>}, {pipeline_mode = #tpu.pipeline_mode<synchronous>, transform_indices = @transform_2, window_bounds = array<i64: 1, 128>}, {pipeline_mode = #tpu.pipeline_mode<synchronous>, transform_indices = @transform_3, window_bounds = array<i64: 128, 128>}, {pipeline_mode = #tpu.pipeline_mode<synchronous>, transform_indices = @transform_4, window_bounds = array<i64: 1, 128>}, {pipeline_mode = #tpu.pipeline_mode<synchronous>, transform_indices = @transform_5, window_bounds = array<i64: 1, 128>}, {pipeline_mode = #tpu.pipeline_mode<synchronous>, transform_indices = @transform_6, window_bounds = array<i64: 1, 1>}, {transform_indices = @transform_7, window_bounds = array<i64: 1, 128>}]} {
    %c0 = arith.constant 0 : index
    %c0_0 = arith.constant 0 : index
    %0 = vector.load %arg1[%c0, %c0_0] : memref<128x32xf32, #tpu.memory_space<vmem>>, vector<128x32xf32>
    %c0_1 = arith.constant 0 : index
    %c0_2 = arith.constant 0 : index
    %1 = vector.load %arg2[%c0_1, %c0_2] : memref<32x128xf32, #tpu.memory_space<vmem>>, vector<32x128xf32>
    %cst = arith.constant dense<0.000000e+00> : vector<128x128xf32>
    %2 = tpu.matmul %0, %1, %cst {dimension_numbers = #tpu.dot_dimension_numbers<[1], [0], [0], [1], [0, 0, 1, 1], [], []>} : vector<128x32xf32>, vector<32x128xf32>, vector<128x128xf32> -> vector<128x128xf32>
    %c0_3 = arith.constant 0 : index
    %c0_4 = arith.constant 0 : index
    %3 = vector.load %arg3[%c0_3, %c0_4] : memref<1x128xf32, #tpu.memory_space<vmem>>, vector<1x128xf32>
    %4 = vector.broadcast %3 : vector<1x128xf32> to vector<128x128xf32>
    %5 = arith.addf %2, %4 : vector<128x128xf32>
    %cst_5 = arith.constant 0.000000e+00 : f32
    %6 = vector.broadcast %cst_5 : f32 to vector<128x128xf32>
    %7 = arith.maximumf %5, %6 : vector<128x128xf32>
    %c0_6 = arith.constant 0 : index
    %c0_7 = arith.constant 0 : index
    %8 = vector.load %arg4[%c0_6, %c0_7] : memref<128x128xf32, #tpu.memory_space<vmem>>, vector<128x128xf32>
    %cst_8 = arith.constant dense<0.000000e+00> : vector<128x128xf32>
    %9 = tpu.matmul %7, %8, %cst_8 {dimension_numbers = #tpu.dot_dimension_numbers<[1], [0], [0], [1], [0, 0, 1, 1], [], []>} : vector<128x128xf32>, vector<128x128xf32>, vector<128x128xf32> -> vector<128x128xf32>
    %c0_9 = arith.constant 0 : index
    %c0_10 = arith.constant 0 : index
    %10 = vector.load %arg5[%c0_9, %c0_10] : memref<1x128xf32, #tpu.memory_space<vmem>>, vector<1x128xf32>
    %11 = vector.broadcast %10 : vector<1x128xf32> to vector<128x128xf32>
    %12 = arith.addf %9, %11 : vector<128x128xf32>
    %cst_11 = arith.constant 0.000000e+00 : f32
    %13 = vector.broadcast %cst_11 : f32 to vector<128x128xf32>
    %14 = arith.maximumf %12, %13 : vector<128x128xf32>
    %c0_12 = arith.constant 0 : index
    %c0_13 = arith.constant 0 : index
    %15 = vector.load %arg6[%c0_12, %c0_13] : memref<1x128xf32, #tpu.memory_space<vmem>>, vector<1x128xf32>
    %cst_14 = arith.constant dense<0.000000e+00> : vector<1x128xf32>
    %16 = tpu.matmul %15, %14, %cst_14 {dimension_numbers = #tpu.dot_dimension_numbers<[1], [1], [0], [0], [0, 0, 1, 0], [], []>} : vector<1x128xf32>, vector<128x128xf32>, vector<1x128xf32> -> vector<1x128xf32>
    %c0_15 = arith.constant 0 : index
    %c0_16 = arith.constant 0 : index
    %17 = vector.load %arg7[%c0_15, %c0_16] : memref<1x1xf32, #tpu.memory_space<vmem>>, vector<1x1xf32>
    %18 = vector.broadcast %17 : vector<1x1xf32> to vector<1x128xf32>
    %19 = arith.addf %16, %18 : vector<1x128xf32>
    %c0_17 = arith.constant 0 : index
    %c0_18 = arith.constant 0 : index
    %20 = vector.load %arg8[%c0_17, %c0_18] : memref<1x128xf32, #tpu.memory_space<vmem>>, vector<1x128xf32>
    tpu.vector_store %arg8[%c0_17, %c0_18], %19 {strides = array<i32>} : memref<1x128xf32, #tpu.memory_space<vmem>>, vector<1x128xf32>,
    return
  }
  func.func @transform_0(%arg0: i32) -> (i32, i32) {
    %c0_i32 = arith.constant 0 : i32
    %c0_i32_0 = arith.constant 0 : i32
    return %arg0, %c0_i32 : i32, i32
  }
  func.func @transform_1(%arg0: i32) -> (i32, i32) {
    %c0_i32 = arith.constant 0 : i32
    %c0_i32_0 = arith.constant 0 : i32
    %c0_i32_1 = arith.constant 0 : i32
    return %c0_i32, %c0_i32_0 : i32, i32
  }
  func.func @transform_2(%arg0: i32) -> (i32, i32) {
    %c0_i32 = arith.constant 0 : i32
    %c0_i32_0 = arith.constant 0 : i32
    %c0_i32_1 = arith.constant 0 : i32
    return %c0_i32, %c0_i32_0 : i32, i32
  }
  func.func @transform_3(%arg0: i32) -> (i32, i32) {
    %c0_i32 = arith.constant 0 : i32
    %c0_i32_0 = arith.constant 0 : i32
    %c0_i32_1 = arith.constant 0 : i32
    return %c0_i32, %c0_i32_0 : i32, i32
  }
  func.func @transform_4(%arg0: i32) -> (i32, i32) {
    %c0_i32 = arith.constant 0 : i32
    %c0_i32_0 = arith.constant 0 : i32
    %c0_i32_1 = arith.constant 0 : i32
    return %c0_i32, %c0_i32_0 : i32, i32
  }
  func.func @transform_5(%arg0: i32) -> (i32, i32) {
    %c0_i32 = arith.constant 0 : i32
    %c0_i32_0 = arith.constant 0 : i32
    %c0_i32_1 = arith.constant 0 : i32
    return %c0_i32, %c0_i32_0 : i32, i32
  }
  func.func @transform_6(%arg0: i32) -> (i32, i32) {
    %c0_i32 = arith.constant 0 : i32
    %c0_i32_0 = arith.constant 0 : i32
    %c0_i32_1 = arith.constant 0 : i32
    return %c0_i32, %c0_i32_0 : i32, i32
  }
  func.func @transform_7(%arg0: i32) -> (i32, i32) {
    %c0_i32 = arith.constant 0 : i32
    %c0_i32_0 = arith.constant 0 : i32
    return %c0_i32, %arg0 : i32, i32
  }
}

module attributes {stable_mosaic.version = 11 : i64} {
  func.func @_mlp_kernel(%arg0: i32, %arg1: memref<128x32xf32, #tpu.memory_space<vmem>>, %arg2: memref<32x128xf32, #tpu.memory_space<vmem>>, %arg3: memref<1x128xf32, #tpu.memory_space<vmem>>, %arg4: memref<128x128xf32, #tpu.memory_space<vmem>>, %arg5: memref<1x128xf32, #tpu.memory_space<vmem>>, %arg6: memref<1x128xf32, #tpu.memory_space<vmem>>, %arg7: memref<1x1xf32, #tpu.memory_space<vmem>>, %arg8: memref<1x128xf32, #tpu.memory_space<vmem>>) attributes {dimension_semantics = [#tpu.dimension_semantics<parallel>], iteration_bounds = array<i64: 1>, scalar_prefetch = 0 : i64, scratch_operands = 0 : i64, tpu.core_type = #tpu.core_type<tc>, window_params = [{transform_indices = @transform_0, window_bounds = array<i64: 128, 32>}, {pipeline_mode = #tpu.pipeline_mode<synchronous>, transform_indices = @transform_1, window_bounds = array<i64: 32, 128>}, {pipeline_mode = #tpu.pipeline_mode<synchronous>, transform_indices = @transform_2, window_bounds = array<i64: 1, 128>}, {pipeline_mode = #tpu.pipeline_mode<synchronous>, transform_indices = @transform_3, window_bounds = array<i64: 128, 128>}, {pipeline_mode = #tpu.pipeline_mode<synchronous>, transform_indices = @transform_4, window_bounds = array<i64: 1, 128>}, {pipeline_mode = #tpu.pipeline_mode<synchronous>, transform_indices = @transform_5, window_bounds = array<i64: 1, 128>}, {pipeline_mode = #tpu.pipeline_mode<synchronous>, transform_indices = @transform_6, window_bounds = array<i64: 1, 1>}, {transform_indices = @transform_7, window_bounds = array<i64: 1, 128>}]} {
    %c0 = arith.constant 0 : index
    %c0_0 = arith.constant 0 : index
    %0 = vector.load %arg1[%c0, %c0_0] : memref<128x32xf32, #tpu.memory_space<vmem>>, vector<128x32xf32>
    %c0_1 = arith.constant 0 : index
    %c0_2 = arith.constant 0 : index
    %1 = vector.load %arg2[%c0_1, %c0_2] : memref<32x128xf32, #tpu.memory_space<vmem>>, vector<32x128xf32>
    %cst = arith.constant dense<0.000000e+00> : vector<128x128xf32>
    %2 = tpu.matmul %0, %1, %cst {dimension_numbers = #tpu.dot_dimension_numbers<[1], [0], [0], [1], [0, 0, 1, 1], [], []>} : vector<128x32xf32>, vector<32x128xf32>, vector<128x128xf32> -> vector<128x128xf32>
    %c0_3 = arith.constant 0 : index
    %c0_4 = arith.constant 0 : index
    %3 = vector.load %arg3[%c0_3, %c0_4] : memref<1x128xf32, #tpu.memory_space<vmem>>, vector<1x128xf32>
    %4 = vector.broadcast %3 : vector<1x128xf32> to vector<128x128xf32>
    %5 = arith.addf %2, %4 : vector<128x128xf32>
    %cst_5 = arith.constant 0.000000e+00 : f32
    %6 = vector.broadcast %cst_5 : f32 to vector<128x128xf32>
    %7 = arith.maximumf %5, %6 : vector<128x128xf32>
    %c0_6 = arith.constant 0 : index
    %c0_7 = arith.constant 0 : index
    %8 = vector.load %arg4[%c0_6, %c0_7] : memref<128x128xf32, #tpu.memory_space<vmem>>, vector<128x128xf32>
    %cst_8 = arith.constant dense<0.000000e+00> : vector<128x128xf32>
    %9 = tpu.matmul %7, %8, %cst_8 {dimension_numbers = #tpu.dot_dimension_numbers<[1], [0], [0], [1], [0, 0, 1, 1], [], []>} : vector<128x128xf32>, vector<128x128xf32>, vector<128x128xf32> -> vector<128x128xf32>
    %c0_9 = arith.constant 0 : index
    %c0_10 = arith.constant 0 : index
    %10 = vector.load %arg5[%c0_9, %c0_10] : memref<1x128xf32, #tpu.memory_space<vmem>>, vector<1x128xf32>
    %11 = vector.broadcast %10 : vector<1x128xf32> to vector<128x128xf32>
    %12 = arith.addf %9, %11 : vector<128x128xf32>
    %cst_11 = arith.constant 0.000000e+00 : f32
    %13 = vector.broadcast %cst_11 : f32 to vector<128x128xf32>
    %14 = arith.maximumf %12, %13 : vector<128x128xf32>
    %c0_12 = arith.constant 0 : index
    %c0_13 = arith.constant 0 : index
    %15 = vector.load %arg6[%c0_12, %c0_13] : memref<1x128xf32, #tpu.memory_space<vmem>>, vector<1x128xf32>
    %cst_14 = arith.constant dense<0.000000e+00> : vector<1x128xf32>
    %16 = tpu.matmul %15, %14, %cst_14 {dimension_numbers = #tpu.dot_dimension_numbers<[1], [1], [0], [0], [0, 0, 1, 0], [], []>} : vector<1x128xf32>, vector<128x128xf32>, vector<1x128xf32> -> vector<1x128xf32>
    %c0_15 = arith.constant 0 : index
    %c0_16 = arith.constant 0 : index
    %17 = vector.load %arg7[%c0_15, %c0_16] : memref<1x1xf32, #tpu.memory_space<vmem>>, vector<1x1xf32>
    %18 = vector.broadcast %17 : vector<1x1xf32> to vector<1x128xf32>
    %19 = arith.addf %16, %18 : vector<1x128xf32>
    %c0_17 = arith.constant 0 : index
    %c0_18 = arith.constant 0 : index
    %20 = vector.load %arg8[%c0_17, %c0_18] : memref<1x128xf32, #tpu.memory_space<vmem>>, vector<1x128xf32>
    tpu.vector_store %arg8[%c0_17, %c0_18], %19 {strides = array<i32>} : memref<1x128xf32, #tpu.memory_space<vmem>>, vector<1x128xf32>,
    return
  }
  func.func @transform_0(%arg0: i32) -> (i32, i32) {
    %c0_i32 = arith.constant 0 : i32
    %c0_i32_0 = arith.constant 0 : i32
    return %arg0, %c0_i32 : i32, i32
  }
  func.func @transform_1(%arg0: i32) -> (i32, i32) {
    %c0_i32 = arith.constant 0 : i32
    %c0_i32_0 = arith.constant 0 : i32
    %c0_i32_1 = arith.constant 0 : i32
    return %c0_i32, %c0_i32_0 : i32, i32
  }
  func.func @transform_2(%arg0: i32) -> (i32, i32) {
    %c0_i32 = arith.constant 0 : i32
    %c0_i32_0 = arith.constant 0 : i32
    %c0_i32_1 = arith.constant 0 : i32
    return %c0_i32, %c0_i32_0 : i32, i32
  }
  func.func @transform_3(%arg0: i32) -> (i32, i32) {
    %c0_i32 = arith.constant 0 : i32
    %c0_i32_0 = arith.constant 0 : i32
    %c0_i32_1 = arith.constant 0 : i32
    return %c0_i32, %c0_i32_0 : i32, i32
  }
  func.func @transform_4(%arg0: i32) -> (i32, i32) {
    %c0_i32 = arith.constant 0 : i32
    %c0_i32_0 = arith.constant 0 : i32
    %c0_i32_1 = arith.constant 0 : i32
    return %c0_i32, %c0_i32_0 : i32, i32
  }
  func.func @transform_5(%arg0: i32) -> (i32, i32) {
    %c0_i32 = arith.constant 0 : i32
    %c0_i32_0 = arith.constant 0 : i32
    %c0_i32_1 = arith.constant 0 : i32
    return %c0_i32, %c0_i32_0 : i32, i32
  }
  func.func @transform_6(%arg0: i32) -> (i32, i32) {
    %c0_i32 = arith.constant 0 : i32
    %c0_i32_0 = arith.constant 0 : i32
    %c0_i32_1 = arith.constant 0 : i32
    return %c0_i32, %c0_i32_0 : i32, i32
  }
  func.func @transform_7(%arg0: i32) -> (i32, i32) {
    %c0_i32 = arith.constant 0 : i32
    %c0_i32_0 = arith.constant 0 : i32
    return %c0_i32, %arg0 : i32, i32
  }
}

</mosaic_0001>

<bundles_post_ra>
// kernel: tpu_custom_call.1
= control target key start
LH: loop header
LB: loop body
LE: loop exit
PB: predicated region body
PF: predicated region fallthrough
CT: control target
= control target key end

     0   :  { %s992_s0 = inlined_call_operand.vmem [shape: f32[128,32], index: 0, kind: input, shape index: {}]   ;;  %s993_s1 = inlined_call_operand.vmem [shape: f32[32,128], index: 1, kind: input, shape index: {}]   ;;  %s994_s2 = inlined_call_operand.vmem [shape: f32[1,128], index: 2, kind: input, shape index: {}]   ;;  %s995_s3 = inlined_call_operand.vmem [shape: f32[128,128], index: 3, kind: input, shape index: {}]   ;;  %s996_s4 = inlined_call_operand.vmem [shape: f32[1,128], index: 4, kind: input, shape index: {}]   ;;  %s997_s5 = inlined_call_operand.vmem [shape: f32[1,128], index: 5, kind: input, shape index: {}]   ;;  %s998_s6 = inlined_call_operand.<no memory space> [shape: f32[1,1], index: 6, kind: input, shape index: {}]   ;;  %s999_s7 = inlined_call_operand.hbm [shape: f32[1,128], index: 7, kind: output, shape index: {}]  }
   0x1   :  { %v12_v0 = vstv %s998_s6 }
   0x2   :  { %13 = vst [vmem:[#allocation2] sm:$0x1] %v12_v0 }
   0x3   :  { %v48_v1 = vld [vmem:[%s993_s1 + $0x18] sm:$0xff]  ;;  %v47_v2 = vld [vmem:[%s993_s1 + $0x10] sm:$0xff]  ;;  %vm56_vm0 = vcmask 261120   ;;  %v29_v3 = vld [vmem:[%s992_s0] sm:$0xff] }
   0x4   :  { %633 = vmatprep.subr.mxu1 %v48_v1  ;;  %v46_v4 = vld [vmem:[%s993_s1 + $0x8] sm:$0xff]  ;;  %641 = vmatprep.mubr.msk.f32.mxu1 %vm56_vm0, %v29_v3  ;;  %v45_v5 = vld [vmem:[%s993_s1] sm:$0xff]  ;;  %v281_v7 = vld [vmem:[%s995_s3 + $0x78] sm:$0xff] }
   0x5   :  { %634 = vmatpush3.msra.mxu1 %v48_v1  ;;  %v30_v6 = vld [vmem:[%s992_s0 + $0x8] sm:$0xff]  ;;  %v31_v8 = vld [vmem:[%s992_s0 + $0x10] sm:$0xff]  ;;  %v32_v10 = vld [vmem:[%s992_s0 + $0x18] sm:$0xff] }
   0x6   :  { %635 = vmatprep.subr.mxu1 %v47_v2  ;;  %v280_v9 = vld [vmem:[%s995_s3 + $0x70] sm:$0xff]  ;;  %v279_v11 = vld [vmem:[%s995_s3 + $0x68] sm:$0xff]  ;;  %v33_v12 = vld [vmem:[%s992_s0 + $0x20] sm:$0xff] }
   0x7   :  { %636 = vmatpush3.msra.mxu1 %v47_v2 }
   0x8   :  { %637 = vmatprep.subr.mxu1 %v46_v4 }
   0x9   :  { %638 = vmatpush3.msra.mxu1 %v46_v4 }
   0xa   :  { %639 = vmatprep.subr.mxu1 %v45_v5 }
   0xb   :  { %640 = vmatpush3.msra.mxu1 %v45_v5 }
   0xc   :  { %642 = vmatmul.mubr.msk.f32.vlgmr.msra.gmra.mxu1 %vm56_vm0, %v30_v6  ;;  %665 = vmatprep.subr.mxu1 %v281_v7 }
   0xd   :  { %644 = vmatprep.mubr.msk.f32.mxu1 %vm56_vm0, %v31_v8  ;;  %666 = vmatpush3.msra.mxu1 %v281_v7 }
   0xe   :  { %667 = vmatprep.subr.mxu1 %v280_v9 }
   0xf   :  { %14 = vsyncpa [#allocation4], 0  ;;  %668 = vmatpush3.msra.mxu1 %v280_v9  ;;  %v278_v13 = vld [vmem:[%s995_s3 + $0x60] sm:$0xff]  ;;  %v34_v14 = vld [vmem:[%s992_s0 + $0x28] sm:$0xff]  ;;  %vm784_vm1 = vmmov 0   ;;  %s786_s25 = smov [#allocation3]  }
  0x10   :  { %645 = vmatmul.mubr.msk.f32.gmra.mxu1 %vm56_vm0, %v32_v10  ;;  %669 = vmatprep.subr.mxu1 %v279_v11  ;;  %v277_v15 = vld [vmem:[%s995_s3 + $0x58] sm:$0xff]  ;;  %v35_v16 = vld [vmem:[%s992_s0 + $0x30] sm:$0xff]  ;;  %v275_v19 = vld [vmem:[%s995_s3 + $0x48] sm:$0xff]  ;;  %s538_s26 = sshll.u32 %s786_s25, 4  ;;  %s539_s26 = int_to_ptr.vmem [resolvable:$true] %s538_s26 }
  0x11   :  { %647 = vmatprep.mubr.msk.f32.mxu1 %vm56_vm0, %v33_v12  ;;  %670 = vmatpush3.msra.mxu1 %v279_v11  ;;  %v276_v17 = vld [vmem:[%s995_s3 + $0x50] sm:$0xff]  ;;  %v36_v18 = vld [vmem:[%s992_s0 + $0x38] sm:$0xff]  ;;  %v37_v20 = vld [vmem:[%s992_s0 + $0x40] sm:$0xff]  ;;  %s761_s27 = scalar_lea.vmem %s539_s26, 16  ;;  %s765_s28 = scalar_lea.vmem %s539_s26, 32 }
  0x12   :  { %671 = vmatprep.subr.mxu1 %v278_v13  ;;  %v274_v21 = vld [vmem:[%s995_s3 + $0x40] sm:$0xff]  ;;  %v38_v22 = vld [vmem:[%s992_s0 + $0x48] sm:$0xff]  ;;  %v273_v23 = vld [vmem:[%s995_s3 + $0x38] sm:$0xff]  ;;  %p762_p0 = scmp.ne.s32.totalorder %s539_s26, %s761_s27  ;;  %p766_p1 = scmp.lt.s32.totalorder %s539_s26, %s539_s26 }
  0x13   :  { %672 = vmatpush3.msra.mxu1 %v278_v13  ;;  %v39_v24 = vld [vmem:[%s992_s0 + $0x50] sm:$0xff]  ;;  %v40_v26 = vld [vmem:[%s992_s0 + $0x58] sm:$0xff]  ;;  %v271_v27 = vld [vmem:[%s995_s3 + $0x28] sm:$0xff]  ;;  %p767_p2 = scmp.lt.s32.totalorder %s765_s28, %s761_s27 }
  0x14   :  { %648 = vmatmul.mubr.msk.f32.gmra.mxu1 %vm56_vm0, %v34_v14  ;;  %673 = vmatprep.subr.mxu1 %v277_v15  ;;  %v272_v25 = vld [vmem:[%s995_s3 + $0x30] sm:$0xff]  ;;  %v41_v28 = vld [vmem:[%s992_s0 + $0x60] sm:$0xff]  ;;  %v42_v30 = vld [vmem:[%s992_s0 + $0x68] sm:$0xff] }
  0x15   :  { %650 = vmatprep.mubr.msk.f32.mxu1 %vm56_vm0, %v35_v16  ;;  %674 = vmatpush3.msra.mxu1 %v277_v15  ;;  %v270_v29 = vld [vmem:[%s995_s3 + $0x20] sm:$0xff]  ;;  %v269_v31 = vld [vmem:[%s995_s3 + $0x18] sm:$0xff]  ;;  %v43_v32 = vld [vmem:[%s992_s0 + $0x70] sm:$0xff]  ;;  %p768_p3 = por %p767_p2, %p766_p1 }
  0x16   :  { %675 = vmatprep.subr.mxu1 %v276_v17  ;;  %v44_v33 = vld [vmem:[%s992_s0 + $0x78] sm:$0xff]  ;;  %v268_v34 = vld [vmem:[%s995_s3 + $0x10] sm:$0xff]  ;;  %v267_v35 = vld [vmem:[%s995_s3 + $0x8] sm:$0xff] }
  0x17   :  { %676 = vmatpush3.msra.mxu1 %v276_v17  ;;  %v266_v36 = vld [vmem:[%s995_s3] sm:$0xff]  ;;  %p769_p4 = pnand %p768_p3, %p762_p0 }
  0x18   :  { %651 = vmatmul.mubr.msk.f32.gmra.mxu1 %vm56_vm0, %v36_v18  ;;  %677 = vmatprep.subr.mxu1 %v275_v19  ;;  %v546_v37 = vld [vmem:[%s994_s2] ss:$0 sm:$0xff] }
  0x19   :  { %653 = vmatprep.mubr.msk.f32.mxu1 %vm56_vm0, %v37_v20  ;;  %678 = vmatpush3.msra.mxu1 %v275_v19 }
  0x1a   :  { %679 = vmatprep.subr.mxu1 %v274_v21 }
  0x1b   :  { %680 = vmatpush3.msra.mxu1 %v274_v21 }
  0x1c   :  { %654 = vmatmul.mubr.msk.f32.gmra.mxu1 %vm56_vm0, %v38_v22  ;;  %681 = vmatprep.subr.mxu1 %v273_v23  ;;  %v783_v22 = vmov 0.0  }
  0x1d   :  { %656 = vmatprep.mubr.msk.f32.mxu1 %vm56_vm0, %v39_v24  ;;  %682 = vmatpush3.msra.mxu1 %v273_v23  ;;  %v451_v23 = vld [vmem:[#allocation2] sm:$0x1]  ;;  %v785_v24 = vmov 0  }
  0x1e   :  { %683 = vmatprep.subr.mxu1 %v272_v25  ;;  %721 = vmatprep.subr.mxu0 %v783_v22 }
  0x1f   :  { %684 = vmatpush3.msra.mxu1 %v272_v25  ;;  %753 = vmatprep.mubr.msk.f32.mxu0 %vm784_vm1, %v783_v22 }
  0x20   :  { %657 = vmatmul.mubr.msk.f32.gmra.mxu1 %vm56_vm0, %v40_v26  ;;  %685 = vmatprep.subr.mxu1 %v271_v27 }
  0x21   :  { %659 = vmatprep.mubr.msk.f32.mxu1 %vm56_vm0, %v41_v28  ;;  %686 = vmatpush3.msra.mxu1 %v271_v27 }
  0x22   :  { %687 = vmatprep.subr.mxu1 %v270_v29  ;;  %760 = vset.pattern.permute.xlu0 %v785_v24 }
  0x23   :  { %688 = vmatpush3.msra.mxu1 %v270_v29  ;;  %454 = vperm.xlu0 %760, %v451_v23  }
  0x24   :  { %660 = vmatmul.mubr.msk.f32.gmra.mxu1 %vm56_vm0, %v42_v30  ;;  %689 = vmatprep.subr.mxu1 %v269_v31 }
  0x25   :  { %662 = vmatprep.mubr.msk.f32.mxu1 %vm56_vm0, %v43_v32  ;;  %690 = vmatpush3.msra.mxu1 %v269_v31 }
  0x26   :  { %691 = vmatprep.subr.mxu1 %v268_v34 }
  0x27   :  { %692 = vmatpush3.msra.mxu1 %v268_v34 }
  0x28   :  { %663 = vmatmul.mubr.msk.f32.gmra.mxu1 %vm56_vm0, %v44_v33  ;;  %693 = vmatprep.subr.mxu1 %v267_v35 }
  0x29   :  { %694 = vmatpush3.msra.mxu1 %v267_v35 }
  0x2a   :  { %695 = vmatprep.subr.mxu1 %v266_v36 }
  0x2b   :  { %696 = vmatpush3.msra.mxu1 %v266_v36 }
  0xcc   :  { %v643_v38 = vpop.f32.mrf.mxu1 }
  0xcd   :  { %v177_v39 = vadd.f32 %v643_v38, %v546_v37 }
  0xce   :  { %v171_v40 = vpop.f32.mrf.mxu1 }
  0xcf   :  { %v172_v41 = vadd.f32 %v546_v37, %v171_v40  ;;  %v251_v44 = vmax.f32 %v177_v39, 0.0  ;;  %v563_v39 = vld [vmem:[%s996_s4] ss:$0 sm:$0xff] }
  0xd0   :  { %v646_v42 = vpop.f32.mrf.mxu1 }
  0xd1   :  { %v250_v43 = vmax.f32 %v172_v41, 0.0  ;;  %v187_v45 = vadd.f32 %v646_v42, %v546_v37 }
  0xd2   :  { %v181_v46 = vpop.f32.mrf.mxu1 }
  0xd3   :  { %v182_v47 = vadd.f32 %v546_v37, %v181_v46  ;;  %697 = vmatprep.mubr.f32.mxu1 %v250_v43  ;;  %v253_v50 = vmax.f32 %v187_v45, 0.0 }
  0xd4   :  { %v649_v48 = vpop.f32.mrf.mxu1  ;;  %698 = vmatmul.mubr.f32.vlgmr.msra.gmra.mxu1 %v251_v44 }
  0xd5   :  { %v252_v49 = vmax.f32 %v182_v47, 0.0  ;;  %v197_v51 = vadd.f32 %v649_v48, %v546_v37 }
  0xd6   :  { %v191_v52 = vpop.f32.mrf.mxu1 }
  0xd7   :  { %v192_v53 = vadd.f32 %v546_v37, %v191_v52  ;;  %700 = vmatprep.mubr.f32.mxu1 %v252_v49  ;;  %v255_v56 = vmax.f32 %v197_v51, 0.0 }
  0xd8   :  { %v652_v54 = vpop.f32.mrf.mxu1  ;;  %701 = vmatmul.mubr.f32.gmra.mxu1 %v253_v50 }
  0xd9   :  { %v254_v55 = vmax.f32 %v192_v53, 0.0  ;;  %v207_v57 = vadd.f32 %v652_v54, %v546_v37 }
  0xda   :  { %v201_v58 = vpop.f32.mrf.mxu1 }
  0xdb   :  { %v202_v59 = vadd.f32 %v546_v37, %v201_v58  ;;  %703 = vmatprep.mubr.f32.mxu1 %v254_v55  ;;  %v257_v62 = vmax.f32 %v207_v57, 0.0 }
  0xdc   :  { %v655_v60 = vpop.f32.mrf.mxu1  ;;  %704 = vmatmul.mubr.f32.gmra.mxu1 %v255_v56 }
  0xdd   :  { %v256_v61 = vmax.f32 %v202_v59, 0.0  ;;  %v217_v63 = vadd.f32 %v655_v60, %v546_v37 }
  0xde   :  { %v211_v0 = vpop.f32.mrf.mxu1 }
  0xdf   :  { %v212_v1 = vadd.f32 %v546_v37, %v211_v0  ;;  %706 = vmatprep.mubr.f32.mxu1 %v256_v61  ;;  %v259_v4 = vmax.f32 %v217_v63, 0.0 }
  0xe0   :  { %v658_v2 = vpop.f32.mrf.mxu1  ;;  %707 = vmatmul.mubr.f32.gmra.mxu1 %v257_v62 }
  0xe1   :  { %v258_v3 = vmax.f32 %v212_v1, 0.0  ;;  %v227_v5 = vadd.f32 %v658_v2, %v546_v37 }
  0xe2   :  { %v221_v6 = vpop.f32.mrf.mxu1 }
  0xe3   :  { %v222_v7 = vadd.f32 %v546_v37, %v221_v6  ;;  %709 = vmatprep.mubr.f32.mxu1 %v258_v3  ;;  %v261_v10 = vmax.f32 %v227_v5, 0.0 }
  0xe4   :  { %v661_v8 = vpop.f32.mrf.mxu1  ;;  %710 = vmatmul.mubr.f32.gmra.mxu1 %v259_v4 }
  0xe5   :  { %v260_v9 = vmax.f32 %v222_v7, 0.0  ;;  %v237_v11 = vadd.f32 %v661_v8, %v546_v37 }
  0xe6   :  { %v231_v12 = vpop.f32.mrf.mxu1 }
  0xe7   :  { %v232_v13 = vadd.f32 %v546_v37, %v231_v12  ;;  %712 = vmatprep.mubr.f32.mxu1 %v260_v9  ;;  %v263_v16 = vmax.f32 %v237_v11, 0.0  ;;  %v457_v11 = vlaneseq }
  0xe8   :  { %v664_v14 = vpop.f32.mrf.mxu1  ;;  %713 = vmatmul.mubr.f32.gmra.mxu1 %v261_v10  ;;  %v450_v10 = vld [vmem:[%s997_s5] sm:$0x1] }
  0xe9   :  { %v262_v15 = vmax.f32 %v232_v13, 0.0  ;;  %v247_v17 = vadd.f32 %v664_v14, %v546_v37  ;;  %v458_v12 = vshrl.u32 %v457_v11, 7  ;;  %v455_v14 = vpop.permute.xlu0 %454 }
  0xea   :  { %v241_v18 = vpop.f32.mrf.mxu1 }
  0xeb   :  { %v242_v19 = vadd.f32 %v546_v37, %v241_v18  ;;  %715 = vmatprep.mubr.f32.mxu1 %v262_v15  ;;  %v265_v21 = vmax.f32 %v247_v17, 0.0  ;;  %v459_v13 = vsub.s32 0, %v458_v12 }
  0xec   :  { %716 = vmatmul.mubr.f32.gmra.mxu1 %v263_v16 }
  0xed   :  { %v264_v20 = vmax.f32 %v242_v19, 0.0  ;;  %v460_v15 = vrot.slane %v455_v14, %v459_v13 }
  0xef   :  { %718 = vmatprep.mubr.f32.mxu1 %v264_v20 }
  0xf0   :  { %719 = vmatmul.mubr.f32.gmra.mxu1 %v265_v21 }
 0x194   :  { %v959_v25 = vpop.f32.mrf.mxu1 }
 0x195   :  { %v361_v5 = vadd.f32 %v959_v25, %v563_v39 }
 0x196   :  { %v961_v26 = vpop.f32.mrf.mxu1 }
 0x197   :  { %v435_v7 = vmax.f32 %v361_v5, 0.0  ;;  %v356_v8 = vadd.f32 %v563_v39, %v961_v26 }
 0x198   :  { %v702_v27 = vpop.f32.mrf.mxu1 }
 0x199   :  { %v371_v1 = vadd.f32 %v702_v27, %v563_v39  ;;  %v434_v9 = vmax.f32 %v356_v8, 0.0 }
 0x19a   :  { %v963_v28 = vpop.f32.mrf.mxu1 }
 0x19b   :  { %v437_v3 = vmax.f32 %v371_v1, 0.0  ;;  %v366_v4 = vadd.f32 %v563_v39, %v963_v28 }
 0x19c   :  { %v705_v29 = vpop.f32.mrf.mxu1 }
 0x19d   :  { %v381_v61 = vadd.f32 %v705_v29, %v563_v39  ;;  %v436_v6 = vmax.f32 %v366_v4, 0.0 }
 0x19e   :  { %v375_v30 = vpop.f32.mrf.mxu1 }
 0x19f   :  { %v439_v63 = vmax.f32 %v381_v61, 0.0  ;;  %v376_v0 = vadd.f32 %v563_v39, %v375_v30 }
 0x1a0   :  { %v708_v31 = vpop.f32.mrf.mxu1 }
 0x1a1   :  { %v391_v57 = vadd.f32 %v708_v31, %v563_v39  ;;  %v438_v2 = vmax.f32 %v376_v0, 0.0 }
 0x1a2   :  { %v385_v32 = vpop.f32.mrf.mxu1 }
 0x1a3   :  { %v441_v59 = vmax.f32 %v391_v57, 0.0  ;;  %v386_v60 = vadd.f32 %v563_v39, %v385_v32 }
 0x1a4   :  { %v711_v33 = vpop.f32.mrf.mxu1 }
 0x1a5   :  { %v401_v53 = vadd.f32 %v711_v33, %v563_v39  ;;  %v440_v62 = vmax.f32 %v386_v60, 0.0 }
 0x1a6   :  { %v395_v34 = vpop.f32.mrf.mxu1 }
 0x1a7   :  { %v443_v55 = vmax.f32 %v401_v53, 0.0  ;;  %v396_v56 = vadd.f32 %v563_v39, %v395_v34 }
 0x1a8   :  { %v714_v35 = vpop.f32.mrf.mxu1 }
 0x1a9   :  { %v411_v49 = vadd.f32 %v714_v35, %v563_v39  ;;  %v442_v58 = vmax.f32 %v396_v56, 0.0 }
 0x1aa   :  { %v405_v36 = vpop.f32.mrf.mxu1 }
 0x1ab   :  { %v445_v51 = vmax.f32 %v411_v49, 0.0  ;;  %v406_v52 = vadd.f32 %v563_v39, %v405_v36 }
 0x1ac   :  { %v717_v37 = vpop.f32.mrf.mxu1 }
 0x1ad   :  { %v421_v45 = vadd.f32 %v717_v37, %v563_v39  ;;  %v444_v54 = vmax.f32 %v406_v52, 0.0 }
 0x1ae   :  { %v415_v38 = vpop.f32.mrf.mxu1 }
 0x1af   :  { %v447_v47 = vmax.f32 %v421_v45, 0.0  ;;  %v416_v48 = vadd.f32 %v563_v39, %v415_v38 }
 0x1b0   :  { %v720_v40 = vpop.f32.mrf.mxu1 }
 0x1b1   :  { %v431_v41 = vadd.f32 %v720_v40, %v563_v39  ;;  %v446_v50 = vmax.f32 %v416_v48, 0.0 }
 0x1b2   :  { %v425_v42 = vpop.f32.mrf.mxu1 }
 0x1b3   :  { %v449_v43 = vmax.f32 %v431_v41, 0.0  ;;  %v426_v44 = vadd.f32 %v563_v39, %v425_v42 }
 0x1b5   :  { %722 = vmatpush3.xpose.msra.mxu0 %v449_v43  ;;  %v448_v46 = vmax.f32 %v426_v44, 0.0 }
 0x1b6   :  { %723 = vmatprep.subr.mxu0 %v783_v22 }
 0x1b9   :  { %724 = vmatpush3.xpose.msra.mxu0 %v448_v46 }
 0x1ba   :  { %725 = vmatprep.subr.mxu0 %v783_v22 }
 0x1bd   :  { %726 = vmatpush3.xpose.msra.mxu0 %v447_v47 }
 0x1be   :  { %727 = vmatprep.subr.mxu0 %v783_v22 }
 0x1c1   :  { %728 = vmatpush3.xpose.msra.mxu0 %v446_v50 }
 0x1c2   :  { %729 = vmatprep.subr.mxu0 %v783_v22 }
 0x1c5   :  { %730 = vmatpush3.xpose.msra.mxu0 %v445_v51 }
 0x1c6   :  { %731 = vmatprep.subr.mxu0 %v783_v22 }
 0x1c9   :  { %732 = vmatpush3.xpose.msra.mxu0 %v444_v54 }
 0x1ca   :  { %733 = vmatprep.subr.mxu0 %v783_v22 }
 0x1cd   :  { %734 = vmatpush3.xpose.msra.mxu0 %v443_v55 }
 0x1ce   :  { %735 = vmatprep.subr.mxu0 %v783_v22 }
 0x1d1   :  { %736 = vmatpush3.xpose.msra.mxu0 %v442_v58 }
 0x1d2   :  { %737 = vmatprep.subr.mxu0 %v783_v22 }
 0x1d5   :  { %738 = vmatpush3.xpose.msra.mxu0 %v441_v59 }
 0x1d6   :  { %739 = vmatprep.subr.mxu0 %v783_v22 }
 0x1d9   :  { %740 = vmatpush3.xpose.msra.mxu0 %v440_v62 }
 0x1da   :  { %741 = vmatprep.subr.mxu0 %v783_v22 }
 0x1dd   :  { %742 = vmatpush3.xpose.msra.mxu0 %v439_v63 }
 0x1de   :  { %743 = vmatprep.subr.mxu0 %v783_v22 }
 0x1e1   :  { %744 = vmatpush3.xpose.msra.mxu0 %v438_v2 }
 0x1e2   :  { %745 = vmatprep.subr.mxu0 %v783_v22 }
 0x1e5   :  { %746 = vmatpush3.xpose.msra.mxu0 %v437_v3 }
 0x1e6   :  { %747 = vmatprep.subr.mxu0 %v783_v22 }
 0x1e9   :  { %748 = vmatpush3.xpose.msra.mxu0 %v436_v6 }
 0x1ea   :  { %749 = vmatprep.subr.mxu0 %v783_v22 }
 0x1ed   :  { %750 = vmatpush3.xpose.msra.mxu0 %v435_v7 }
 0x1ee   :  { %751 = vmatprep.subr.mxu0 %v783_v22 }
 0x1f1   :  { %752 = vmatpush3.xpose.msra.mxu0 %v434_v9 }
 0x1f4   :  { %754 = vmatmul.mubr.f32.vlgmr.msra.gmra.mxu0 %v450_v10 }
 0x2b4   :  { %v527_v16 = vpop.f32.mrf.mxu0 }
 0x2b5   :  { %v528_v17 = vadd.f32 %v527_v16, %v460_v15 }
 0x2b6   :  { %v755_v18 = vpop.f32.mrf.mxu0 }
 0x2b7   :  { %531 = vst [vmem:[#allocation3] sm:$0x1] %v528_v17 }
 0x2b8   :  { %772 = shalt.err (!%p769_p4)
}
 0x2b9   :  { %541 = dma.vmem_to_hbm [thread:$0]  %s539_s26, 16, %s999_s7, [#allocation4]  }
 0x2ba   :  { %781 = dma.done.wait [#allocation4], 16  }
 0x2bb   :  { %782 = vsyncadd [#allocation4], 4294967280 }
 0x2bc   :  { %545 = vsyncpa [#allocation4], 1 }

// kernel: tpu_custom_call.1
= control target key start
LH: loop header
LB: loop body
LE: loop exit
PB: predicated region body
PF: predicated region fallthrough
CT: control target
= control target key end

     0   :  { %s992_s0 = inlined_call_operand.vmem [shape: f32[128,32], index: 0, kind: input, shape index: {}]   ;;  %s993_s1 = inlined_call_operand.vmem [shape: f32[32,128], index: 1, kind: input, shape index: {}]   ;;  %s994_s2 = inlined_call_operand.vmem [shape: f32[1,128], index: 2, kind: input, shape index: {}]   ;;  %s995_s3 = inlined_call_operand.vmem [shape: f32[128,128], index: 3, kind: input, shape index: {}]   ;;  %s996_s4 = inlined_call_operand.vmem [shape: f32[1,128], index: 4, kind: input, shape index: {}]   ;;  %s997_s5 = inlined_call_operand.vmem [shape: f32[1,128], index: 5, kind: input, shape index: {}]   ;;  %s998_s6 = inlined_call_operand.<no memory space> [shape: f32[1,1], index: 6, kind: input, shape index: {}]   ;;  %s999_s7 = inlined_call_operand.hbm [shape: f32[1,128], index: 7, kind: output, shape index: {}]  }
   0x1   :  { %v12_v0 = vstv %s998_s6 }
   0x2   :  { %13 = vst [vmem:[#allocation2] sm:$0x1] %v12_v0 }
   0x3   :  { %v48_v1 = vld [vmem:[%s993_s1 + $0x18] sm:$0xff]  ;;  %v47_v2 = vld [vmem:[%s993_s1 + $0x10] sm:$0xff]  ;;  %vm56_vm0 = vcmask 261120   ;;  %v29_v3 = vld [vmem:[%s992_s0] sm:$0xff] }
   0x4   :  { %633 = vmatprep.subr.mxu1 %v48_v1  ;;  %v46_v4 = vld [vmem:[%s993_s1 + $0x8] sm:$0xff]  ;;  %641 = vmatprep.mubr.msk.f32.mxu1 %vm56_vm0, %v29_v3  ;;  %v45_v5 = vld [vmem:[%s993_s1] sm:$0xff]  ;;  %v281_v7 = vld [vmem:[%s995_s3 + $0x78] sm:$0xff] }
   0x5   :  { %634 = vmatpush3.msra.mxu1 %v48_v1  ;;  %v30_v6 = vld [vmem:[%s992_s0 + $0x8] sm:$0xff]  ;;  %v31_v8 = vld [vmem:[%s992_s0 + $0x10] sm:$0xff]  ;;  %v32_v10 = vld [vmem:[%s992_s0 + $0x18] sm:$0xff] }
   0x6   :  { %635 = vmatprep.subr.mxu1 %v47_v2  ;;  %v280_v9 = vld [vmem:[%s995_s3 + $0x70] sm:$0xff]  ;;  %v279_v11 = vld [vmem:[%s995_s3 + $0x68] sm:$0xff]  ;;  %v33_v12 = vld [vmem:[%s992_s0 + $0x20] sm:$0xff] }
   0x7   :  { %636 = vmatpush3.msra.mxu1 %v47_v2 }
   0x8   :  { %637 = vmatprep.subr.mxu1 %v46_v4 }
   0x9   :  { %638 = vmatpush3.msra.mxu1 %v46_v4 }
   0xa   :  { %639 = vmatprep.subr.mxu1 %v45_v5 }
   0xb   :  { %640 = vmatpush3.msra.mxu1 %v45_v5 }
   0xc   :  { %642 = vmatmul.mubr.msk.f32.vlgmr.msra.gmra.mxu1 %vm56_vm0, %v30_v6  ;;  %665 = vmatprep.subr.mxu1 %v281_v7 }
   0xd   :  { %644 = vmatprep.mubr.msk.f32.mxu1 %vm56_vm0, %v31_v8  ;;  %666 = vmatpush3.msra.mxu1 %v281_v7 }
   0xe   :  { %667 = vmatprep.subr.mxu1 %v280_v9 }
   0xf   :  { %14 = vsyncpa [#allocation4], 0  ;;  %668 = vmatpush3.msra.mxu1 %v280_v9  ;;  %v278_v13 = vld [vmem:[%s995_s3 + $0x60] sm:$0xff]  ;;  %v34_v14 = vld [vmem:[%s992_s0 + $0x28] sm:$0xff]  ;;  %vm784_vm1 = vmmov 0   ;;  %s786_s25 = smov [#allocation3]  }
  0x10   :  { %645 = vmatmul.mubr.msk.f32.gmra.mxu1 %vm56_vm0, %v32_v10  ;;  %669 = vmatprep.subr.mxu1 %v279_v11  ;;  %v277_v15 = vld [vmem:[%s995_s3 + $0x58] sm:$0xff]  ;;  %v35_v16 = vld [vmem:[%s992_s0 + $0x30] sm:$0xff]  ;;  %v275_v19 = vld [vmem:[%s995_s3 + $0x48] sm:$0xff]  ;;  %s538_s26 = sshll.u32 %s786_s25, 4  ;;  %s539_s26 = int_to_ptr.vmem [resolvable:$true] %s538_s26 }
  0x11   :  { %647 = vmatprep.mubr.msk.f32.mxu1 %vm56_vm0, %v33_v12  ;;  %670 = vmatpush3.msra.mxu1 %v279_v11  ;;  %v276_v17 = vld [vmem:[%s995_s3 + $0x50] sm:$0xff]  ;;  %v36_v18 = vld [vmem:[%s992_s0 + $0x38] sm:$0xff]  ;;  %v37_v20 = vld [vmem:[%s992_s0 + $0x40] sm:$0xff]  ;;  %s761_s27 = scalar_lea.vmem %s539_s26, 16  ;;  %s765_s28 = scalar_lea.vmem %s539_s26, 32 }
  0x12   :  { %671 = vmatprep.subr.mxu1 %v278_v13  ;;  %v274_v21 = vld [vmem:[%s995_s3 + $0x40] sm:$0xff]  ;;  %v38_v22 = vld [vmem:[%s992_s0 + $0x48] sm:$0xff]  ;;  %v273_v23 = vld [vmem:[%s995_s3 + $0x38] sm:$0xff]  ;;  %p762_p0 = scmp.ne.s32.totalorder %s539_s26, %s761_s27  ;;  %p766_p1 = scmp.lt.s32.totalorder %s539_s26, %s539_s26 }
  0x13   :  { %672 = vmatpush3.msra.mxu1 %v278_v13  ;;  %v39_v24 = vld [vmem:[%s992_s0 + $0x50] sm:$0xff]  ;;  %v40_v26 = vld [vmem:[%s992_s0 + $0x58] sm:$0xff]  ;;  %v271_v27 = vld [vmem:[%s995_s3 + $0x28] sm:$0xff]  ;;  %p767_p2 = scmp.lt.s32.totalorder %s765_s28, %s761_s27 }
  0x14   :  { %648 = vmatmul.mubr.msk.f32.gmra.mxu1 %vm56_vm0, %v34_v14  ;;  %673 = vmatprep.subr.mxu1 %v277_v15  ;;  %v272_v25 = vld [vmem:[%s995_s3 + $0x30] sm:$0xff]  ;;  %v41_v28 = vld [vmem:[%s992_s0 + $0x60] sm:$0xff]  ;;  %v42_v30 = vld [vmem:[%s992_s0 + $0x68] sm:$0xff] }
  0x15   :  { %650 = vmatprep.mubr.msk.f32.mxu1 %vm56_vm0, %v35_v16  ;;  %674 = vmatpush3.msra.mxu1 %v277_v15  ;;  %v270_v29 = vld [vmem:[%s995_s3 + $0x20] sm:$0xff]  ;;  %v269_v31 = vld [vmem:[%s995_s3 + $0x18] sm:$0xff]  ;;  %v43_v32 = vld [vmem:[%s992_s0 + $0x70] sm:$0xff]  ;;  %p768_p3 = por %p767_p2, %p766_p1 }
  0x16   :  { %675 = vmatprep.subr.mxu1 %v276_v17  ;;  %v44_v33 = vld [vmem:[%s992_s0 + $0x78] sm:$0xff]  ;;  %v268_v34 = vld [vmem:[%s995_s3 + $0x10] sm:$0xff]  ;;  %v267_v35 = vld [vmem:[%s995_s3 + $0x8] sm:$0xff] }
  0x17   :  { %676 = vmatpush3.msra.mxu1 %v276_v17  ;;  %v266_v36 = vld [vmem:[%s995_s3] sm:$0xff]  ;;  %p769_p4 = pnand %p768_p3, %p762_p0 }
  0x18   :  { %651 = vmatmul.mubr.msk.f32.gmra.mxu1 %vm56_vm0, %v36_v18  ;;  %677 = vmatprep.subr.mxu1 %v275_v19  ;;  %v546_v37 = vld [vmem:[%s994_s2] ss:$0 sm:$0xff] }
  0x19   :  { %653 = vmatprep.mubr.msk.f32.mxu1 %vm56_vm0, %v37_v20  ;;  %678 = vmatpush3.msra.mxu1 %v275_v19 }
  0x1a   :  { %679 = vmatprep.subr.mxu1 %v274_v21 }
  0x1b   :  { %680 = vmatpush3.msra.mxu1 %v274_v21 }
  0x1c   :  { %654 = vmatmul.mubr.msk.f32.gmra.mxu1 %vm56_vm0, %v38_v22  ;;  %681 = vmatprep.subr.mxu1 %v273_v23  ;;  %v783_v22 = vmov 0.0  }
  0x1d   :  { %656 = vmatprep.mubr.msk.f32.mxu1 %vm56_vm0, %v39_v24  ;;  %682 = vmatpush3.msra.mxu1 %v273_v23  ;;  %v451_v23 = vld [vmem:[#allocation2] sm:$0x1]  ;;  %v785_v24 = vmov 0  }
  0x1e   :  { %683 = vmatprep.subr.mxu1 %v272_v25  ;;  %721 = vmatprep.subr.mxu0 %v783_v22 }
  0x1f   :  { %684 = vmatpush3.msra.mxu1 %v272_v25  ;;  %753 = vmatprep.mubr.msk.f32.mxu0 %vm784_vm1, %v783_v22 }
  0x20   :  { %657 = vmatmul.mubr.msk.f32.gmra.mxu1 %vm56_vm0, %v40_v26  ;;  %685 = vmatprep.subr.mxu1 %v271_v27 }
  0x21   :  { %659 = vmatprep.mubr.msk.f32.mxu1 %vm56_vm0, %v41_v28  ;;  %686 = vmatpush3.msra.mxu1 %v271_v27 }
  0x22   :  { %687 = vmatprep.subr.mxu1 %v270_v29  ;;  %760 = vset.pattern.permute.xlu0 %v785_v24 }
  0x23   :  { %688 = vmatpush3.msra.mxu1 %v270_v29  ;;  %454 = vperm.xlu0 %760, %v451_v23  }
  0x24   :  { %660 = vmatmul.mubr.msk.f32.gmra.mxu1 %vm56_vm0, %v42_v30  ;;  %689 = vmatprep.subr.mxu1 %v269_v31 }
  0x25   :  { %662 = vmatprep.mubr.msk.f32.mxu1 %vm56_vm0, %v43_v32  ;;  %690 = vmatpush3.msra.mxu1 %v269_v31 }
  0x26   :  { %691 = vmatprep.subr.mxu1 %v268_v34 }
  0x27   :  { %692 = vmatpush3.msra.mxu1 %v268_v34 }
  0x28   :  { %663 = vmatmul.mubr.msk.f32.gmra.mxu1 %vm56_vm0, %v44_v33  ;;  %693 = vmatprep.subr.mxu1 %v267_v35 }
  0x29   :  { %694 = vmatpush3.msra.mxu1 %v267_v35 }
  0x2a   :  { %695 = vmatprep.subr.mxu1 %v266_v36 }
  0x2b   :  { %696 = vmatpush3.msra.mxu1 %v266_v36 }
  0xcc   :  { %v643_v38 = vpop.f32.mrf.mxu1 }
  0xcd   :  { %v177_v39 = vadd.f32 %v643_v38, %v546_v37 }
  0xce   :  { %v171_v40 = vpop.f32.mrf.mxu1 }
  0xcf   :  { %v172_v41 = vadd.f32 %v546_v37, %v171_v40  ;;  %v251_v44 = vmax.f32 %v177_v39, 0.0  ;;  %v563_v39 = vld [vmem:[%s996_s4] ss:$0 sm:$0xff] }
  0xd0   :  { %v646_v42 = vpop.f32.mrf.mxu1 }
  0xd1   :  { %v250_v43 = vmax.f32 %v172_v41, 0.0  ;;  %v187_v45 = vadd.f32 %v646_v42, %v546_v37 }
  0xd2   :  { %v181_v46 = vpop.f32.mrf.mxu1 }
  0xd3   :  { %v182_v47 = vadd.f32 %v546_v37, %v181_v46  ;;  %697 = vmatprep.mubr.f32.mxu1 %v250_v43  ;;  %v253_v50 = vmax.f32 %v187_v45, 0.0 }
  0xd4   :  { %v649_v48 = vpop.f32.mrf.mxu1  ;;  %698 = vmatmul.mubr.f32.vlgmr.msra.gmra.mxu1 %v251_v44 }
  0xd5   :  { %v252_v49 = vmax.f32 %v182_v47, 0.0  ;;  %v197_v51 = vadd.f32 %v649_v48, %v546_v37 }
  0xd6   :  { %v191_v52 = vpop.f32.mrf.mxu1 }
  0xd7   :  { %v192_v53 = vadd.f32 %v546_v37, %v191_v52  ;;  %700 = vmatprep.mubr.f32.mxu1 %v252_v49  ;;  %v255_v56 = vmax.f32 %v197_v51, 0.0 }
  0xd8   :  { %v652_v54 = vpop.f32.mrf.mxu1  ;;  %701 = vmatmul.mubr.f32.gmra.mxu1 %v253_v50 }
  0xd9   :  { %v254_v55 = vmax.f32 %v192_v53, 0.0  ;;  %v207_v57 = vadd.f32 %v652_v54, %v546_v37 }
  0xda   :  { %v201_v58 = vpop.f32.mrf.mxu1 }
  0xdb   :  { %v202_v59 = vadd.f32 %v546_v37, %v201_v58  ;;  %703 = vmatprep.mubr.f32.mxu1 %v254_v55  ;;  %v257_v62 = vmax.f32 %v207_v57, 0.0 }
  0xdc   :  { %v655_v60 = vpop.f32.mrf.mxu1  ;;  %704 = vmatmul.mubr.f32.gmra.mxu1 %v255_v56 }
  0xdd   :  { %v256_v61 = vmax.f32 %v202_v59, 0.0  ;;  %v217_v63 = vadd.f32 %v655_v60, %v546_v37 }
  0xde   :  { %v211_v0 = vpop.f32.mrf.mxu1 }
  0xdf   :  { %v212_v1 = vadd.f32 %v546_v37, %v211_v0  ;;  %706 = vmatprep.mubr.f32.mxu1 %v256_v61  ;;  %v259_v4 = vmax.f32 %v217_v63, 0.0 }
  0xe0   :  { %v658_v2 = vpop.f32.mrf.mxu1  ;;  %707 = vmatmul.mubr.f32.gmra.mxu1 %v257_v62 }
  0xe1   :  { %v258_v3 = vmax.f32 %v212_v1, 0.0  ;;  %v227_v5 = vadd.f32 %v658_v2, %v546_v37 }
  0xe2   :  { %v221_v6 = vpop.f32.mrf.mxu1 }
  0xe3   :  { %v222_v7 = vadd.f32 %v546_v37, %v221_v6  ;;  %709 = vmatprep.mubr.f32.mxu1 %v258_v3  ;;  %v261_v10 = vmax.f32 %v227_v5, 0.0 }
  0xe4   :  { %v661_v8 = vpop.f32.mrf.mxu1  ;;  %710 = vmatmul.mubr.f32.gmra.mxu1 %v259_v4 }
  0xe5   :  { %v260_v9 = vmax.f32 %v222_v7, 0.0  ;;  %v237_v11 = vadd.f32 %v661_v8, %v546_v37 }
  0xe6   :  { %v231_v12 = vpop.f32.mrf.mxu1 }
  0xe7   :  { %v232_v13 = vadd.f32 %v546_v37, %v231_v12  ;;  %712 = vmatprep.mubr.f32.mxu1 %v260_v9  ;;  %v263_v16 = vmax.f32 %v237_v11, 0.0  ;;  %v457_v11 = vlaneseq }
  0xe8   :  { %v664_v14 = vpop.f32.mrf.mxu1  ;;  %713 = vmatmul.mubr.f32.gmra.mxu1 %v261_v10  ;;  %v450_v10 = vld [vmem:[%s997_s5] sm:$0x1] }
  0xe9   :  { %v262_v15 = vmax.f32 %v232_v13, 0.0  ;;  %v247_v17 = vadd.f32 %v664_v14, %v546_v37  ;;  %v458_v12 = vshrl.u32 %v457_v11, 7  ;;  %v455_v14 = vpop.permute.xlu0 %454 }
  0xea   :  { %v241_v18 = vpop.f32.mrf.mxu1 }
  0xeb   :  { %v242_v19 = vadd.f32 %v546_v37, %v241_v18  ;;  %715 = vmatprep.mubr.f32.mxu1 %v262_v15  ;;  %v265_v21 = vmax.f32 %v247_v17, 0.0  ;;  %v459_v13 = vsub.s32 0, %v458_v12 }
  0xec   :  { %716 = vmatmul.mubr.f32.gmra.mxu1 %v263_v16 }
  0xed   :  { %v264_v20 = vmax.f32 %v242_v19, 0.0  ;;  %v460_v15 = vrot.slane %v455_v14, %v459_v13 }
  0xef   :  { %718 = vmatprep.mubr.f32.mxu1 %v264_v20 }
  0xf0   :  { %719 = vmatmul.mubr.f32.gmra.mxu1 %v265_v21 }
 0x194   :  { %v959_v25 = vpop.f32.mrf.mxu1 }
 0x195   :  { %v361_v5 = vadd.f32 %v959_v25, %v563_v39 }
 0x196   :  { %v961_v26 = vpop.f32.mrf.mxu1 }
 0x197   :  { %v435_v7 = vmax.f32 %v361_v5, 0.0  ;;  %v356_v8 = vadd.f32 %v563_v39, %v961_v26 }
 0x198   :  { %v702_v27 = vpop.f32.mrf.mxu1 }
 0x199   :  { %v371_v1 = vadd.f32 %v702_v27, %v563_v39  ;;  %v434_v9 = vmax.f32 %v356_v8, 0.0 }
 0x19a   :  { %v963_v28 = vpop.f32.mrf.mxu1 }
 0x19b   :  { %v437_v3 = vmax.f32 %v371_v1, 0.0  ;;  %v366_v4 = vadd.f32 %v563_v39, %v963_v28 }
 0x19c   :  { %v705_v29 = vpop.f32.mrf.mxu1 }
 0x19d   :  { %v381_v61 = vadd.f32 %v705_v29, %v563_v39  ;;  %v436_v6 = vmax.f32 %v366_v4, 0.0 }
 0x19e   :  { %v375_v30 = vpop.f32.mrf.mxu1 }
 0x19f   :  { %v439_v63 = vmax.f32 %v381_v61, 0.0  ;;  %v376_v0 = vadd.f32 %v563_v39, %v375_v30 }
 0x1a0   :  { %v708_v31 = vpop.f32.mrf.mxu1 }
 0x1a1   :  { %v391_v57 = vadd.f32 %v708_v31, %v563_v39  ;;  %v438_v2 = vmax.f32 %v376_v0, 0.0 }
 0x1a2   :  { %v385_v32 = vpop.f32.mrf.mxu1 }
 0x1a3   :  { %v441_v59 = vmax.f32 %v391_v57, 0.0  ;;  %v386_v60 = vadd.f32 %v563_v39, %v385_v32 }
 0x1a4   :  { %v711_v33 = vpop.f32.mrf.mxu1 }
 0x1a5   :  { %v401_v53 = vadd.f32 %v711_v33, %v563_v39  ;;  %v440_v62 = vmax.f32 %v386_v60, 0.0 }
 0x1a6   :  { %v395_v34 = vpop.f32.mrf.mxu1 }
 0x1a7   :  { %v443_v55 = vmax.f32 %v401_v53, 0.0  ;;  %v396_v56 = vadd.f32 %v563_v39, %v395_v34 }
 0x1a8   :  { %v714_v35 = vpop.f32.mrf.mxu1 }
 0x1a9   :  { %v411_v49 = vadd.f32 %v714_v35, %v563_v39  ;;  %v442_v58 = vmax.f32 %v396_v56, 0.0 }
 0x1aa   :  { %v405_v36 = vpop.f32.mrf.mxu1 }
 0x1ab   :  { %v445_v51 = vmax.f32 %v411_v49, 0.0  ;;  %v406_v52 = vadd.f32 %v563_v39, %v405_v36 }
 0x1ac   :  { %v717_v37 = vpop.f32.mrf.mxu1 }
 0x1ad   :  { %v421_v45 = vadd.f32 %v717_v37, %v563_v39  ;;  %v444_v54 = vmax.f32 %v406_v52, 0.0 }
 0x1ae   :  { %v415_v38 = vpop.f32.mrf.mxu1 }
 0x1af   :  { %v447_v47 = vmax.f32 %v421_v45, 0.0  ;;  %v416_v48 = vadd.f32 %v563_v39, %v415_v38 }
 0x1b0   :  { %v720_v40 = vpop.f32.mrf.mxu1 }
 0x1b1   :  { %v431_v41 = vadd.f32 %v720_v40, %v563_v39  ;;  %v446_v50 = vmax.f32 %v416_v48, 0.0 }
 0x1b2   :  { %v425_v42 = vpop.f32.mrf.mxu1 }
 0x1b3   :  { %v449_v43 = vmax.f32 %v431_v41, 0.0  ;;  %v426_v44 = vadd.f32 %v563_v39, %v425_v42 }
 0x1b5   :  { %722 = vmatpush3.xpose.msra.mxu0 %v449_v43  ;;  %v448_v46 = vmax.f32 %v426_v44, 0.0 }
 0x1b6   :  { %723 = vmatprep.subr.mxu0 %v783_v22 }
 0x1b9   :  { %724 = vmatpush3.xpose.msra.mxu0 %v448_v46 }
 0x1ba   :  { %725 = vmatprep.subr.mxu0 %v783_v22 }
 0x1bd   :  { %726 = vmatpush3.xpose.msra.mxu0 %v447_v47 }
 0x1be   :  { %727 = vmatprep.subr.mxu0 %v783_v22 }
 0x1c1   :  { %728 = vmatpush3.xpose.msra.mxu0 %v446_v50 }
 0x1c2   :  { %729 = vmatprep.subr.mxu0 %v783_v22 }
 0x1c5   :  { %730 = vmatpush3.xpose.msra.mxu0 %v445_v51 }
 0x1c6   :  { %731 = vmatprep.subr.mxu0 %v783_v22 }
 0x1c9   :  { %732 = vmatpush3.xpose.msra.mxu0 %v444_v54 }
 0x1ca   :  { %733 = vmatprep.subr.mxu0 %v783_v22 }
 0x1cd   :  { %734 = vmatpush3.xpose.msra.mxu0 %v443_v55 }
 0x1ce   :  { %735 = vmatprep.subr.mxu0 %v783_v22 }
 0x1d1   :  { %736 = vmatpush3.xpose.msra.mxu0 %v442_v58 }
 0x1d2   :  { %737 = vmatprep.subr.mxu0 %v783_v22 }
 0x1d5   :  { %738 = vmatpush3.xpose.msra.mxu0 %v441_v59 }
 0x1d6   :  { %739 = vmatprep.subr.mxu0 %v783_v22 }
 0x1d9   :  { %740 = vmatpush3.xpose.msra.mxu0 %v440_v62 }
 0x1da   :  { %741 = vmatprep.subr.mxu0 %v783_v22 }
 0x1dd   :  { %742 = vmatpush3.xpose.msra.mxu0 %v439_v63 }
 0x1de   :  { %743 = vmatprep.subr.mxu0 %v783_v22 }
 0x1e1   :  { %744 = vmatpush3.xpose.msra.mxu0 %v438_v2 }
 0x1e2   :  { %745 = vmatprep.subr.mxu0 %v783_v22 }
 0x1e5   :  { %746 = vmatpush3.xpose.msra.mxu0 %v437_v3 }
 0x1e6   :  { %747 = vmatprep.subr.mxu0 %v783_v22 }
 0x1e9   :  { %748 = vmatpush3.xpose.msra.mxu0 %v436_v6 }
 0x1ea   :  { %749 = vmatprep.subr.mxu0 %v783_v22 }
 0x1ed   :  { %750 = vmatpush3.xpose.msra.mxu0 %v435_v7 }
 0x1ee   :  { %751 = vmatprep.subr.mxu0 %v783_v22 }
 0x1f1   :  { %752 = vmatpush3.xpose.msra.mxu0 %v434_v9 }
 0x1f4   :  { %754 = vmatmul.mubr.f32.vlgmr.msra.gmra.mxu0 %v450_v10 }
 0x2b4   :  { %v527_v16 = vpop.f32.mrf.mxu0 }
 0x2b5   :  { %v528_v17 = vadd.f32 %v527_v16, %v460_v15 }
 0x2b6   :  { %v755_v18 = vpop.f32.mrf.mxu0 }
 0x2b7   :  { %531 = vst [vmem:[#allocation3] sm:$0x1] %v528_v17 }
 0x2b8   :  { %772 = shalt.err (!%p769_p4)
}
 0x2b9   :  { %541 = dma.vmem_to_hbm [thread:$0]  %s539_s26, 16, %s999_s7, [#allocation4]  }
 0x2ba   :  { %781 = dma.done.wait [#allocation4], 16  }
 0x2bb   :  { %782 = vsyncadd [#allocation4], 4294967280 }
 0x2bc   :  { %545 = vsyncpa [#allocation4], 1 }

</bundles_post_ra>
